<compile_context>
chip_gen: v7x
topology: tpu7x:2x2x1
jax: 0.10.0
libtpu: 0.0.40
codegen_flags: <defaults>
</compile_context>

<pallas_src>
import functools

import jax
import jax.numpy as jnp
from jax.experimental import pallas as pl
from jax.experimental.pallas import tpu as pltpu

BIT = 8
THD_NEG = -(2 ** (BIT - 1))        # -128
THD_POS = 2 ** (BIT - 1) - 1       # 127
EPS = 1e-5
_SCALE_COEF = 2.0 / (THD_POS ** 0.5)

_LANE_CANDIDATES = (8192, 4096, 2048, 1024, 512, 256, 128)
_ROW_CANDIDATES = (1024, 512, 256, 128, 64, 32, 16, 8)
_CHUNK_BYTES = 1 << 20              # per-chunk compute size in the fused kernel


# --------------------------------------------------------------------------
# Generation-aware budgets
# --------------------------------------------------------------------------
@functools.lru_cache(maxsize=None)
def _budgets():
    """Returns (fused_max_bytes, max_block_bytes, vmem_limit_bytes)."""
    cap = 128 * 1024 * 1024
    try:
        info = pltpu.get_tpu_info()
        c = getattr(info, "vmem_capacity_bytes", None)
        if c:
            cap = int(c)
    except Exception:
        pass
    if cap >= 100 * 1024 * 1024:
        # v5e / v6e: 128 MiB physical VMEM.
        return 16 << 20, 6 << 20, 96 << 20
    # v7x: 64 MiB physical VMEM per TensorCore.
    return 8 << 20, 4 << 20, 48 << 20


# --------------------------------------------------------------------------
# Kernels
# --------------------------------------------------------------------------
def _fused_lsq_kernel(x_ref, o_ref, scale_ref, *, inv_n, chunk_rows):
    """Single-pass: reduce |x|, derive power-of-two scale, fake-quantize.

    The whole tensor is VMEM-resident (one HBM read).  Compute is chunked over
    rows so elementwise temporaries stay ~1 MiB regardless of tensor size.
    """
    m = x_ref.shape[0]

    # Pass A: abs-sum over row chunks (VALU adds; one tiny reduce per chunk).
    acc = jnp.zeros((1, 1), jnp.float32)
    for r0 in range(0, m, chunk_rows):
        r1 = min(m, r0 + chunk_rows)
        xc = x_ref[r0:r1, :].astype(jnp.float32)
        acc = acc + jnp.sum(jnp.abs(xc), keepdims=True)

    # Scale derivation (all (1,1)-shaped; power-of-two snap -> exact inverse).
    s_scale = jnp.maximum(acc * (inv_n * _SCALE_COEF), EPS)
    p = jnp.round(jnp.log2(s_scale))
    scale = jnp.exp2(p)
    inv_scale = jnp.exp2(-p)

    # Pass B: quantize, chunk by chunk, straight into the output block.
    for r0 in range(0, m, chunk_rows):
        r1 = min(m, r0 + chunk_rows)
        xc = x_ref[r0:r1, :].astype(jnp.float32) * inv_scale
        q = jnp.round(jnp.clip(xc, float(THD_NEG), float(THD_POS)))
        o_ref[r0:r1, :] = (q * scale).astype(o_ref.dtype)

    scale_ref[...] = scale


def _abs_sum_kernel(x_ref, part_ref, acc_ref, *, rows):
    """Tiled pass 1: per-core partial sum(|x|).

    Accumulates into a small (8, lane) VMEM scratch with plain VPU adds (the
    8-row sub-slices are summed as they are read, so the scratch is rows/8x
    smaller than a block).  The single cross-lane XLU reduce + store happens
    once, on the last step of the inner (arbitrary) axis.  The leading grid
    axis is 'parallel' so each v7x TensorCore produces its own (8,128) block.
    """
    j = pl.program_id(1)

    @pl.when(j == 0)
    def _():
        acc_ref[...] = jnp.zeros_like(acc_ref)

    s = jnp.abs(x_ref[0:8, :].astype(jnp.float32))
    for r in range(8, rows, 8):
        s = s + jnp.abs(x_ref[r:r + 8, :].astype(jnp.float32))
    acc_ref[...] += s

    @pl.when(j == pl.num_programs(1) - 1)
    def _():
        total = jnp.sum(acc_ref[...], keepdims=True)          # (1, 1)
        part_ref[...] = jnp.broadcast_to(total, part_ref.shape)


def _quant_kernel(part_ref, x_ref, o_ref, *, inv_n):
    """Tiled pass 2: derive scale in-kernel from the partials, fake-quantize.

    `part_ref` is a tiny (split*8, 128) block with a constant index map, so it
    is DMA'd into VMEM once and stays resident; the per-step scale derivation
    is a 2-vreg reduce plus a few EUP/VALU ops, fully hidden under the block
    DMA.  No inter-pass XLA scalar glue, no scalar HBM round-trip.
    """
    # Each core block holds 8*128 copies of its partial total.
    absum = jnp.sum(part_ref[...], keepdims=True) * (1.0 / 1024.0)
    s_scale = jnp.maximum(absum * (inv_n * _SCALE_COEF), EPS)
    p = jnp.round(jnp.log2(s_scale))
    scale = jnp.exp2(p)
    inv_scale = jnp.exp2(-p)

    x = x_ref[...].astype(jnp.float32) * inv_scale
    q = jnp.round(jnp.clip(x, float(THD_NEG), float(THD_POS)))
    o_ref[...] = (q * scale).astype(o_ref.dtype)


# --------------------------------------------------------------------------
# Layout helpers
# --------------------------------------------------------------------------
def _choose_layout(n):
    for lane in _LANE_CANDIDATES:
        if n % lane == 0:
            return n // lane, lane
    # TODO(synk): pad + mask the reduction/store for sizes not divisible by 128.
    raise ValueError(f"tensor size must be a multiple of 128, got {n}")


def _choose_row_block(m, lane, itemsize, max_block_bytes):
    """Largest row-block that divides m, respecting dtype packing minimums and
    preferring an even block count so both v7x TensorCores share pass 1."""
    min_rows = max(8, 32 // itemsize)          # f32: 8, bf16: 16, int8/fp8: 32
    max_rows = max(min_rows, max_block_bytes // (lane * itemsize))
    fallback = None
    for rows in _ROW_CANDIDATES:
        if rows < min_rows or rows > max_rows or m % rows:
            continue
        if (m // rows) % 2 == 0:
            return rows
        if fallback is None:
            fallback = rows
    if fallback is not None:
        return fallback                        # odd block count -> single core
    raise ValueError(f"cannot tile {m} rows into multiple-of-{min_rows} blocks")


def _make_row_index_map(steps):
    def index_map(c, j):
        return (c * steps + j, 0)
    return index_map


# --------------------------------------------------------------------------
# Wrapper (forward of LsqQuantizer4input with update=False, first call)
# --------------------------------------------------------------------------
def lsq_quantize_input(x):
    orig_shape = x.shape
    orig_dtype = x.dtype
    n = x.size
    itemsize = jnp.dtype(orig_dtype).itemsize
    fused_max, max_block_bytes, vmem_limit = _budgets()

    m, lane = _choose_layout(n)
    x2 = x.reshape(m, lane)

    if n * itemsize <= fused_max:
        # ------- single fused pass: x read from HBM exactly once -------
        chunk_rows = max(8, (_CHUNK_BYTES // (lane * 4)) // 8 * 8)
        kernel = functools.partial(_fused_lsq_kernel, inv_n=1.0 / n,
                                   chunk_rows=chunk_rows)
        xq, scale = pl.pallas_call(
            kernel,
            out_shape=(jax.ShapeDtypeStruct((m, lane), orig_dtype),
                       jax.ShapeDtypeStruct((1, 1), jnp.float32)),
            grid=(1,),
            in_specs=[pl.BlockSpec((m, lane), lambda i: (0, 0))],
            out_specs=(pl.BlockSpec((m, lane), lambda i: (0, 0)),
                       pl.BlockSpec((1, 1), lambda i: (0, 0))),
            compiler_params=pltpu.CompilerParams(
                dimension_semantics=("arbitrary",),
                vmem_limit_bytes=vmem_limit),
        )(x2)
        return xq.reshape(orig_shape), scale.reshape(1)

    # ------- tiled two-pass path for large activations -------
    rows = _choose_row_block(m, lane, itemsize, max_block_bytes)
    num_blocks = m // rows
    split = 2 if (num_blocks % 2 == 0 and num_blocks >= 2) else 1
    steps = num_blocks // split

    partials = pl.pallas_call(
        functools.partial(_abs_sum_kernel, rows=rows),
        out_shape=jax.ShapeDtypeStruct((split * 8, 128), jnp.float32),
        grid=(split, steps),
        in_specs=[pl.BlockSpec((rows, lane), _make_row_index_map(steps))],
        out_specs=pl.BlockSpec((8, 128), lambda c, j: (c, 0)),
        scratch_shapes=[pltpu.VMEM((8, lane), jnp.float32)],
        compiler_params=pltpu.CompilerParams(
            dimension_semantics=("parallel", "arbitrary"),
            vmem_limit_bytes=vmem_limit),
    )(x2)

    # TODO(synk): if the caller never needs the un-quantized x afterwards,
    # alias x2 to the output here (input_output_aliases={1: 0}) and donate x.
    xq = pl.pallas_call(
        functools.partial(_quant_kernel, inv_n=1.0 / n),
        out_shape=jax.ShapeDtypeStruct((m, lane), orig_dtype),
        grid=(num_blocks,),
        in_specs=[pl.BlockSpec((split * 8, 128), lambda i: (0, 0)),
                  pl.BlockSpec((rows, lane), lambda i: (i, 0))],
        out_specs=pl.BlockSpec((rows, lane), lambda i: (i, 0)),
        compiler_params=pltpu.CompilerParams(
            dimension_semantics=("parallel",),
            vmem_limit_bytes=vmem_limit),
    )(partials, x2)

    # Returned scalar `scale` recomputed from the partials on the host side;
    # this sits off pass-2's critical path (pass 2 derives its own copy).
    abs_sum = jnp.sum(partials) * (1.0 / 1024.0)
    s_scale = jnp.maximum(abs_sum * (1.0 / n) * _SCALE_COEF, EPS)
    scale = jnp.exp2(jnp.round(jnp.log2(s_scale))).astype(jnp.float32)

    return xq.reshape(orig_shape), scale.reshape(1)


# --------------------------------------------------------------------------
# Pure-JAX reference
# --------------------------------------------------------------------------
def _reference(x):
    s = jnp.mean(jnp.abs(x)) * 2.0 / (THD_POS ** 0.5)
    s_scale = jnp.maximum(s, EPS)
    scale = jnp.exp2(jnp.round(jnp.log2(s_scale)))
    xq = jnp.round(jnp.clip(x / scale, THD_NEG, THD_POS)) * scale
    return xq, scale.reshape(1)


if __name__ == "__main__":
    # 1) Primary check: small NCHW activation -> fused single-pass kernel.
    x_small = jax.random.normal(jax.random.PRNGKey(0), (2, 4, 16, 16),
                                dtype=jnp.float32)
    out, scale = lsq_quantize_input(x_small)
    out = jax.block_until_ready(out)
    scale = jax.block_until_ready(scale)
    ref_out, ref_scale = _reference(x_small)
    assert out.shape == x_small.shape and out.dtype == x_small.dtype
    assert scale.shape == (1,)
    assert jnp.allclose(scale, ref_scale, rtol=1e-6, atol=1e-6)
    assert jnp.allclose(out, ref_out, rtol=1e-5, atol=1e-5)

    # 2) Medium activation (4 MiB) -> fused path with multi-chunk in-kernel loop.
    x_med = jax.random.normal(jax.random.PRNGKey(1), (8, 32, 64, 64),
                              dtype=jnp.float32)
    out_m, scale_m = lsq_quantize_input(x_med)
    out_m = jax.block_until_ready(out_m)
    ref_out_m, ref_scale_m = _reference(x_med)
    assert jnp.allclose(scale_m, ref_scale_m, rtol=1e-6, atol=1e-6)
    assert jnp.allclose(out_m, ref_out_m, rtol=1e-5, atol=1e-5)

    # 3) Large activation (32 MiB) -> tiled two-pass path (split reduction,
    #    small (8,lane) accumulator, in-kernel scale derivation in pass 2).
    x_big = jax.random.normal(jax.random.PRNGKey(2), (8, 256, 64, 64),
                              dtype=jnp.float32)
    out_b, scale_b = lsq_quantize_input(x_big)
    out_b = jax.block_until_ready(out_b)
    ref_out_b, ref_scale_b = _reference(x_big)
    assert jnp.allclose(scale_b, ref_scale_b, rtol=1e-6, atol=1e-6)
    assert jnp.allclose(out_b, ref_out_b, rtol=1e-5, atol=1e-5)

    print("KERNEL_OK")
</pallas_src>

<mosaic_0001>
module attributes {stable_mosaic.version = 11 : i64} {
  func.func @_fused_lsq_kernel(%arg0: i32, %arg1: memref<1x2048xf32, #tpu.memory_space<vmem>>, %arg2: memref<1x2048xf32, #tpu.memory_space<vmem>>, %arg3: memref<1x1xf32, #tpu.memory_space<vmem>>) attributes {dimension_semantics = [#tpu.dimension_semantics<arbitrary>], iteration_bounds = array<i64: 1>, scalar_prefetch = 0 : i64, scratch_operands = 0 : i64, tpu.core_type = #tpu.core_type<tc>, window_params = [{pipeline_mode = #tpu.pipeline_mode<synchronous>, transform_indices = @transform_0, window_bounds = array<i64: 1, 2048>}, {pipeline_mode = #tpu.pipeline_mode<synchronous>, transform_indices = @transform_1, window_bounds = array<i64: 1, 2048>}, {pipeline_mode = #tpu.pipeline_mode<synchronous>, transform_indices = @transform_2, window_bounds = array<i64: 1, 1>}]} {
    %cst = arith.constant 0.000000e+00 : f32
    %0 = vector.broadcast %cst : f32 to vector<1x1xf32>
    %c0 = arith.constant 0 : index
    %c0_0 = arith.constant 0 : index
    %1 = vector.load %arg1[%c0, %c0_0] : memref<1x2048xf32, #tpu.memory_space<vmem>>, vector<1x2048xf32>
    %2 = math.absf %1 : vector<1x2048xf32>
    %3 = vector.shape_cast %2 : vector<1x2048xf32> to vector<1x1x2048xf32>
    %cst_1 = arith.constant dense<0.000000e+00> : vector<1xf32>
    %4 = vector.multi_reduction <add>, %3, %cst_1 [1, 2] : vector<1x1x2048xf32> to vector<1xf32>
    %5 = vector.shape_cast %4 : vector<1xf32> to vector<1x1x1xf32>
    %6 = vector.extract %5[0, 0, 0] : f32 from vector<1x1x1xf32>
    %7 = vector.broadcast %6 : f32 to vector<1x1xf32>
    %8 = arith.addf %0, %7 : vector<1x1xf32>
    %cst_2 = arith.constant 8.66559057E-5 : f32
    %9 = vector.broadcast %cst_2 : f32 to vector<1x1xf32>
    %10 = arith.mulf %8, %9 : vector<1x1xf32>
    %cst_3 = arith.constant 9.99999974E-6 : f32
    %11 = vector.broadcast %cst_3 : f32 to vector<1x1xf32>
    %12 = arith.maximumf %10, %11 : vector<1x1xf32>
    %13 = math.log %12 : vector<1x1xf32>
    %cst_4 = arith.constant 2.000000e+00 : f32
    %14 = math.log %cst_4 : f32
    %15 = vector.broadcast %14 : f32 to vector<1x1xf32>
    %16 = arith.divf %13, %15 : vector<1x1xf32>
    %17 = math.roundeven %16 : vector<1x1xf32>
    %18 = math.exp2 %17 : vector<1x1xf32>
    %cst_5 = arith.constant 0.000000e+00 : f32
    %19 = vector.broadcast %cst_5 : f32 to vector<1x1xf32>
    %20 = arith.subf %19, %17 : vector<1x1xf32>
    %21 = math.exp2 %20 : vector<1x1xf32>
    %c0_6 = arith.constant 0 : index
    %c0_7 = arith.constant 0 : index
    %22 = vector.load %arg1[%c0_6, %c0_7] : memref<1x2048xf32, #tpu.memory_space<vmem>>, vector<1x2048xf32>
    %23 = vector.broadcast %21 : vector<1x1xf32> to vector<1x2048xf32>
    %24 = arith.mulf %22, %23 : vector<1x2048xf32>
    %cst_8 = arith.constant -1.280000e+02 : f32
    %cst_9 = arith.constant 1.270000e+02 : f32
    %25 = vector.broadcast %cst_8 : f32 to vector<1x2048xf32>
    %26 = arith.maximumf %25, %24 : vector<1x2048xf32>
    %27 = vector.broadcast %cst_9 : f32 to vector<1x2048xf32>
    %28 = arith.minimumf %27, %26 : vector<1x2048xf32>
    %29 = math.roundeven %28 : vector<1x2048xf32>
    %30 = vector.broadcast %18 : vector<1x1xf32> to vector<1x2048xf32>
    %31 = arith.mulf %29, %30 : vector<1x2048xf32>
    %c0_10 = arith.constant 0 : index
    %c0_11 = arith.constant 0 : index
    %32 = vector.load %arg2[%c0_10, %c0_11] : memref<1x2048xf32, #tpu.memory_space<vmem>>, vector<1x2048xf32>
    tpu.vector_store %arg2[%c0_10, %c0_11], %31 {strides = array<i32>} : memref<1x2048xf32, #tpu.memory_space<vmem>>, vector<1x2048xf32>,
    %c0_12 = arith.constant 0 : index
    %c0_13 = arith.constant 0 : index
    %33 = vector.load %arg3[%c0_12, %c0_13] : memref<1x1xf32, #tpu.memory_space<vmem>>, vector<1x1xf32>
    tpu.vector_store %arg3[%c0_12, %c0_13], %18 {strides = array<i32>} : memref<1x1xf32, #tpu.memory_space<vmem>>, vector<1x1xf32>,
    return
  }
  func.func @transform_0(%arg0: i32) -> (i32, i32) {
    %c0_i32 = arith.constant 0 : i32
    %c0_i32_0 = arith.constant 0 : i32
    %c0_i32_1 = arith.constant 0 : i32
    return %c0_i32, %c0_i32_0 : i32, i32
  }
  func.func @transform_1(%arg0: i32) -> (i32, i32) {
    %c0_i32 = arith.constant 0 : i32
    %c0_i32_0 = arith.constant 0 : i32
    %c0_i32_1 = arith.constant 0 : i32
    return %c0_i32, %c0_i32_0 : i32, i32
  }
  func.func @transform_2(%arg0: i32) -> (i32, i32) {
    %c0_i32 = arith.constant 0 : i32
    %c0_i32_0 = arith.constant 0 : i32
    %c0_i32_1 = arith.constant 0 : i32
    return %c0_i32, %c0_i32_0 : i32, i32
  }
}

</mosaic_0001>

<bundles_post_ra>
// kernel: tpu_custom_call.1
= control target key start
LH: loop header
LB: loop body
LE: loop exit
PB: predicated region body
PF: predicated region fallthrough
CT: control target
= control target key end

     0   :  { %8 = vsyncpa [#allocation3], 0  ;;  %s370_s0 = inlined_call_operand.hbm [shape: f32[1,2048], index: 0, kind: input, shape index: {}]   ;;  %s371_s1 = inlined_call_operand.hbm [shape: f32[1,2048], index: 1, kind: output, shape index: {0}]   ;;  %s372_s2 = inlined_call_operand.hbm [shape: f32[1,1], index: 2, kind: output, shape index: {1}]  }
   0x1   :  { %9 = vsyncpa [#allocation4], 0 }
   0x2   :  { %10 = vsyncpa [#allocation7], 0  ;;  %s292_s9 = smov [#allocation2]   ;;  %s220_s13 = scalar_lea.hbm %s370_s0, 256 }
   0x3   :  { %s17_s10 = sshll.u32 %s292_s9, 4  ;;  %p221_p0 = scmp.ne.s32.totalorder %s370_s0, %s220_s13  ;;  %s18_s10 = int_to_ptr.vmem [resolvable:$true] %s17_s10 }
   0x4   :  { %p224_p1 = scmp.lt.u32.totalorder %s220_s13, %s370_s0 }
   0x6   :  { %p226_p2 = pnand %p224_p1, %p221_p0 }
   0x8   :  { %229 = shalt.err (!%p226_p2)
}
   0x9   :  { %s230_s18 = scalar_lea.vmem %s18_s10, 256  ;;  %p235_p4 = scmp.lt.s32.totalorder %s18_s10, %s18_s10 }
   0xa   :  { %p231_p3 = scmp.ne.s32.totalorder %s18_s10, %s230_s18  ;;  %p236_p5 = scmp.lt.s32.totalorder %s230_s18, %s230_s18 }
   0xc   :  { %p237_p6 = por %p236_p5, %p235_p4 }
   0xe   :  { %p238_p7 = pnand %p237_p6, %p231_p3 }
  0x10   :  { %241 = shalt.err (!%p238_p7)
}
  0x11   :  { %20 = dma.hbm_to_vmem [thread:$0]  %s370_s0, 256, %s18_s10, [#allocation3]  }
  0x12   :  { %286 = dma.done.wait [#allocation3], 256  }
  0x13   :  { %287 = vsyncadd [#allocation3], 4294967040  ;;  %v30_v0 = vlaneseq  ;;  %v322_v5 = vld [vmem:[#allocation2] sm:$0xff]  ;;  %vm110_vm0 = vcmask 1040384   ;;  %v328_v19 = vld [vmem:[#allocation2 + $0x8] sm:$0xff]  ;;  %s293_s21 = smov [#allocation6]  }
  0x14   :  { %v26_v6 = vand.u32 2147483647, %v322_v5  ;;  %v27_v25 = vand.u32 2147483647, %v328_v19  ;;  %s193_s22 = sshll.u32 %s293_s21, 4  ;;  %vm175_vm1 = vcmask 0   ;;  %s194_s22 = int_to_ptr.vmem [resolvable:$true] %s193_s22 }
  0x15   :  { %v31_v1 = vshrl.u32 %v30_v0, 7  ;;  %s242_s23 = scalar_lea.vmem %s194_s22, 16  ;;  %s246_s24 = scalar_lea.vmem %s194_s22, 32 }
  0x16   :  { %p243_p8 = scmp.ne.s32.totalorder %s194_s22, %s242_s23  ;;  %p247_p9 = scmp.lt.s32.totalorder %s194_s22, %s194_s22 }
  0x17   :  { %v32_v2 = vsub.s32 0, %v31_v1  ;;  %v36_v3 = vsub.s32 1, %v31_v1  ;;  %v40_v4 = vsub.s32 2, %v31_v1  ;;  %v44_v7 = vsub.s32 3, %v31_v1  ;;  %p248_p10 = scmp.lt.s32.totalorder %s246_s24, %s242_s23 }
  0x18   :  { %v48_v11 = vsub.s32 4, %v31_v1  ;;  %v52_v13 = vsub.s32 5, %v31_v1  ;;  %v56_v14 = vsub.s32 6, %v31_v1  ;;  %v60_v22 = vsub.s32 7, %v31_v1 }
  0x19   :  { %v33_v8 = vrot.slane %v26_v6, %v32_v2  ;;  %v37_v9 = vrot.slane %v26_v6, %v36_v3  ;;  %v41_v10 = vrot.slane %v26_v6, %v40_v4  ;;  %v45_v12 = vrot.slane %v26_v6, %v44_v7  ;;  %p249_p11 = por %p248_p10, %p247_p9 }
  0x1a   :  { %v49_v15 = vrot.slane %v26_v6, %v48_v11  ;;  %v53_v21 = vrot.slane %v26_v6, %v52_v13  ;;  %v57_v26 = vrot.slane %v26_v6, %v56_v14  ;;  %v61_v29 = vrot.slane %v26_v6, %v60_v22 }
  0x1b   :  { %v111_v16 = vsel %vm110_vm0, %v33_v8, 0.0  ;;  %v112_v17 = vsel %vm110_vm0, %v37_v9, 0.0  ;;  %v114_v18 = vsel %vm110_vm0, %v41_v10, 0.0  ;;  %v116_v23 = vsel %vm110_vm0, %v45_v12, 0.0  ;;  %p250_p12 = pnand %p249_p11, %p243_p8 }
  0x1c   :  { %v113_v20 = vadd.f32 %v112_v17, %v111_v16  ;;  %v118_v27 = vsel %vm110_vm0, %v49_v15, 0.0  ;;  %v120_v30 = vsel %vm110_vm0, %v53_v21, 0.0  ;;  %v65_v32 = vrot.slane %v27_v25, %v32_v2 }
  0x1d   :  { %v122_v33 = vsel %vm110_vm0, %v57_v26, 0.0  ;;  %v69_v35 = vrot.slane %v27_v25, %v36_v3  ;;  %v124_v36 = vsel %vm110_vm0, %v61_v29, 0.0  ;;  %v73_v38 = vrot.slane %v27_v25, %v40_v4 }
  0x1e   :  { %v115_v24 = vadd.f32 %v114_v18, %v113_v20  ;;  %v126_v39 = vsel %vm110_vm0, %v65_v32, 0.0  ;;  %v77_v41 = vrot.slane %v27_v25, %v44_v7  ;;  %v81_v44 = vrot.slane %v27_v25, %v48_v11 }
  0x1f   :  { %v128_v42 = vsel %vm110_vm0, %v69_v35, 0.0  ;;  %v130_v45 = vsel %vm110_vm0, %v73_v38, 0.0  ;;  %v85_v47 = vrot.slane %v27_v25, %v52_v13  ;;  %v89_v50 = vrot.slane %v27_v25, %v56_v14 }
  0x20   :  { %v117_v28 = vadd.f32 %v116_v23, %v115_v24  ;;  %v132_v48 = vsel %vm110_vm0, %v77_v41, 0.0  ;;  %v134_v51 = vsel %vm110_vm0, %v81_v44, 0.0  ;;  %v93_v53 = vrot.slane %v27_v25, %v60_v22 }
  0x21   :  { %v136_v54 = vsel %vm110_vm0, %v85_v47, 0.0  ;;  %v138_v56 = vsel %vm110_vm0, %v89_v50, 0.0 }
  0x22   :  { %v119_v31 = vadd.f32 %v118_v27, %v117_v28  ;;  %v140_v58 = vsel %vm110_vm0, %v93_v53, 0.0 }
  0x24   :  { %v121_v34 = vadd.f32 %v120_v30, %v119_v31 }
  0x26   :  { %v123_v37 = vadd.f32 %v122_v33, %v121_v34 }
  0x28   :  { %v125_v40 = vadd.f32 %v124_v36, %v123_v37 }
  0x2a   :  { %v127_v43 = vadd.f32 %v126_v39, %v125_v40 }
  0x2c   :  { %v129_v46 = vadd.f32 %v128_v42, %v127_v43 }
  0x2e   :  { %v131_v49 = vadd.f32 %v130_v45, %v129_v46 }
  0x30   :  { %v133_v52 = vadd.f32 %v132_v48, %v131_v49 }
  0x32   :  { %v135_v55 = vadd.f32 %v134_v51, %v133_v52 }
  0x34   :  { %v137_v57 = vadd.f32 %v136_v54, %v135_v55 }
  0x36   :  { %v139_v59 = vadd.f32 %v138_v56, %v137_v57 }
  0x38   :  { %v141_v60 = vadd.f32 %v140_v58, %v139_v59 }
  0x3a   :  { %142 = vadd.xlane.f32.xlu0 %v141_v60 }
  0xc7   :  { %v143_v61 = vpop.xlane.xlu0 %142 }
  0xc8   :  { %v144_v62 = vrot.slane %v143_v61, 4 }
  0xca   :  { %v145_v63 = vadd.f32 %v144_v62, %v143_v61 }
  0xcc   :  { %v146_v0 = vrot.slane %v145_v63, 2 }
  0xce   :  { %v147_v1 = vadd.f32 %v146_v0, %v145_v63 }
  0xd0   :  { %v148_v2 = vrot.slane %v147_v1, 1 }
  0xd2   :  { %v149_v3 = vadd.f32 %v148_v2, %v147_v1 }
  0xd4   :  { %206 = vpush %v149_v3 }
 0x105   :  { %s207_s0 = spop %206 }
 0x106   :  { %v151_v4 = vstv %s207_s0 }
 0x107   :  { %v153_v6 = vmul.f32 8.6655906e-05, %v151_v4 }
 0x109   :  { %v154_v7 = vmax.f32 %v153_v6, 1e-05 }
 0x10b   :  { %214 = vlog2.f32 %v154_v7 }
 0x115   :  { %v215_v8 = vpop.eup %214 }
 0x116   :  { %v156_v9 = vmul.f32 0.6931472, %v215_v8 }
 0x118   :  { %v158_v10 = vmul.f32 1.442695, %v156_v9 }
 0x11a   :  { %v208_v11 = vround.rtne.f32 %v158_v10 }
 0x11c   :  { %216 = vpow2.f32 %v208_v11  ;;  %v161_v12 = vsub.f32 0.0, %v208_v11 }
 0x11e   :  { %218 = vpow2.f32 %v161_v12 }
 0x126   :  { %v217_v13 = vpop.eup %216 }
 0x127   :  { %176 = vst.msk [vmem:[#allocation6] sm:$0x1] %vm175_vm1, %v217_v13 }
 0x128   :  { %v219_v14 = vpop.eup %218 }
 0x129   :  { %253 = shalt.err (!%p250_p12)
}
 0x12a   :  { %s254_s27 = scalar_lea.hbm %s372_s2, 16 }
 0x12b   :  { %p255_p13 = scmp.ne.s32.totalorder %s372_s2, %s254_s27  ;;  %p258_p0 = scmp.lt.u32.totalorder %s254_s27, %s372_s2 }
 0x12d   :  { %p260_p1 = pnand %p258_p0, %p255_p13 }
 0x12f   :  { %263 = shalt.err (!%p260_p1)
}
 0x130   :  { %196 = dma.vmem_to_hbm [thread:$0]  %s194_s22, 16, %s372_s2, [#allocation7]   ;;  %v163_v15 = vmul.f32 %v219_v14, %v322_v5  ;;  %v164_v16 = vmul.f32 %v219_v14, %v328_v19 }
 0x131   :  { %s294_s6 = smov [#allocation5]  }
 0x132   :  { %v165_v17 = vmax.f32 %v163_v15, -128.0  ;;  %v166_v18 = vmax.f32 %v164_v16, -128.0  ;;  %s183_s7 = sshll.u32 %s294_s6, 4  ;;  %s184_s7 = int_to_ptr.vmem [resolvable:$true] %s183_s7 }
 0x133   :  { %s264_s8 = scalar_lea.vmem %s184_s7, 256  ;;  %p269_p3 = scmp.lt.s32.totalorder %s184_s7, %s184_s7 }
 0x134   :  { %v167_v20 = vmin.f32 %v165_v17, 127.0  ;;  %v168_v21 = vmin.f32 %v166_v18, 127.0  ;;  %p265_p2 = scmp.ne.s32.totalorder %s184_s7, %s264_s8  ;;  %p270_p4 = scmp.lt.s32.totalorder %s264_s8, %s264_s8 }
 0x136   :  { %v209_v22 = vround.rtne.f32 %v167_v20  ;;  %v210_v23 = vround.rtne.f32 %v168_v21  ;;  %p271_p5 = por %p270_p4, %p269_p3 }
 0x138   :  { %v171_v24 = vmul.f32 %v217_v13, %v209_v22  ;;  %v172_v25 = vmul.f32 %v217_v13, %v210_v23  ;;  %p272_p6 = pnand %p271_p5, %p265_p2 }
 0x13a   :  { %173 = vst [vmem:[#allocation5] sm:$0xff] %v171_v24  ;;  %174 = vst [vmem:[#allocation5 + $0x8] sm:$0xff] %v172_v25 }
 0x13b   :  { %275 = shalt.err (!%p272_p6)
}
 0x13c   :  { %s276_s10 = scalar_lea.hbm %s371_s1, 256 }
 0x13d   :  { %p277_p7 = scmp.ne.s32.totalorder %s371_s1, %s276_s10  ;;  %p280_p8 = scmp.lt.u32.totalorder %s276_s10, %s371_s1 }
 0x13f   :  { %p282_p9 = pnand %p280_p8, %p277_p7 }
 0x141   :  { %285 = shalt.err (!%p282_p9)
}
 0x142   :  { %186 = dma.vmem_to_hbm [thread:$0]  %s184_s7, 256, %s371_s1, [#allocation4]  }
 0x143   :  { %288 = dma.done.wait [#allocation4], 256  }
 0x144   :  { %289 = vsyncadd [#allocation4], 4294967040 }
 0x145   :  { %290 = dma.done.wait [#allocation7], 16  }
 0x146   :  { %291 = vsyncadd [#allocation7], 4294967280 }
 0x147   :  { %203 = vsyncpa [#allocation3], 1 }
 0x148   :  { %204 = vsyncpa [#allocation4], 1 }
 0x149   :  { %205 = vsyncpa [#allocation7], 1 }

</bundles_post_ra>
